<compile_context>
chip_gen: v7x
topology: tpu7x:2x2x1
jax: 0.10.0
libtpu: 0.0.40
codegen_flags: <defaults>
</compile_context>

<pallas_src>
import math

import jax
import jax.numpy as jnp
from jax.experimental import pallas as pl
from jax.experimental.pallas import tpu as pltpu


def embedder_kernel(t_ref, freqs_ref, w1_ref, b1_ref, w2_ref, b2_ref, o_ref):
    # t_ref:     (B, 1)     f32
    # freqs_ref: (1, half)  f32
    # w1_ref:    (F, Hp)    f32   (pre-transposed, zero-padded to Hp)
    # b1_ref:    (1, Hp)    f32
    # w2_ref:    (Hp, tn)   bf16  (current output-N tile of W2)
    # b2_ref:    (1, tn)    f32
    # o_ref:     (B, tn)    out_dtype
    args = t_ref[...] * freqs_ref[...]                        # (B, half) f32
    # half is a multiple of 128 -> this concat sits on a 128-lane boundary:
    # two adjacent vregs, no XLU shuffle.  One K=F MXU contraction follows.
    emb = jnp.concatenate([jnp.cos(args), jnp.sin(args)], axis=-1)   # (B, F) f32

    # Linear 1 (f32 operands, f32 accumulate) + SiLU.
    h = (jnp.dot(emb.astype(w1_ref.dtype), w1_ref[...],
                 preferred_element_type=jnp.float32) + b1_ref[...])  # (B, Hp)
    h = h * jax.nn.sigmoid(h)                                        # SiLU

    # Linear 2: only the current output-N tile of W2 is resident (bf16 stream).
    o = (jnp.dot(h.astype(w2_ref.dtype), w2_ref[...],
                 preferred_element_type=jnp.float32) + b2_ref[...])  # (B, tn)
    o_ref[...] = o.astype(o_ref.dtype)


def prepare_embedder_params(w1, b1, w2, b2, frequency_embedding_size=256,
                            max_period=10000, w1_dtype=jnp.float32,
                            w2_dtype=jnp.bfloat16):
    """One-time parameter preparation (call at load time, NOT per step)."""
    H = w1.shape[0]
    F = frequency_embedding_size
    # TODO(synk): odd frequency_embedding_size (zero-pad last column) not handled.
    assert F % 2 == 0, "frequency_embedding_size must be even"
    half = F // 2
    assert half % 128 == 0, "half must be lane-aligned (128) for the fused concat"
    Hp = ((H + 127) // 128) * 128                       # lane-dense hidden size

    freqs = jnp.exp(
        -math.log(max_period) * jnp.arange(half, dtype=jnp.float32) / half
    ).reshape(1, half)

    # torch layout W1: (H, F) -> (F, Hp) transposed + zero-padded.  Padded
    # columns have zero weight & bias, so padded lanes are exactly SiLU(0)=0.
    w1p = (jnp.zeros((F, Hp), jnp.float32)
           .at[:, :H].set(jnp.transpose(w1.astype(jnp.float32)))
           .astype(w1_dtype))
    b1p = jnp.zeros((1, Hp), jnp.float32).at[0, :H].set(b1.astype(jnp.float32))

    # torch layout W2: (H, H) -> (Hp, Hp) transposed + zero-padded, bf16 stream.
    w2p = (jnp.zeros((Hp, Hp), jnp.float32)
           .at[:H, :H].set(jnp.transpose(w2.astype(jnp.float32)))
           .astype(w2_dtype))
    b2p = jnp.zeros((1, Hp), jnp.float32).at[0, :H].set(b2.astype(jnp.float32))

    return dict(freqs=freqs, w1=w1p, b1=b1p, w2=w2p, b2=b2p,
                H=H, Hp=Hp, half=half)


def _pick_block_n(Hp, target=512):
    """Largest multiple of 128 dividing Hp, <= target; prefers nj >= 2 (and an
    even nj when possible) so the output-N 'parallel' axis keeps both v7x
    TensorCores busy."""
    target = max(128, min(target, Hp))
    if Hp >= 256:
        target = min(target, Hp // 2)           # guarantee nj >= 2
    cands = [c for c in range(128, target + 1, 128) if Hp % c == 0]
    if not cands:                               # Hp itself is a multiple of 128
        return Hp
    even = [c for c in cands if (Hp // c) % 2 == 0]
    return max(even) if even else max(cands)


def _vmem_need_bytes(B, F, Hp, tn, w1_itemsize, w2_itemsize, out_itemsize,
                     const_buffers=2):
    """Rough per-block VMEM footprint (pipeline double-buffers by default)."""
    const = (B * 1) * 4 + (F // 2) * 4 + F * Hp * w1_itemsize + Hp * 4
    tiled = Hp * tn * w2_itemsize + tn * 4 + B * tn * out_itemsize
    return const_buffers * const + 2 * tiled


def embedder_forward(t, prepped, block_n=None, out_dtype=jnp.float32,
                     keep_padded=False, single_buffer_constants=False):
    """t: (B,) float timesteps.

    Returns (B, H) by default; pass out_dtype=jnp.bfloat16 and keep_padded=True
    to hand a lane-dense (B, Hp) bf16 slab straight to a fused consumer
    (halves writeback and avoids a masked 32-lane slice downstream).
    """
    freqs, w1p, b1p, w2p, b2p = (prepped["freqs"], prepped["w1"], prepped["b1"],
                                 prepped["w2"], prepped["b2"])
    H, Hp, half = prepped["H"], prepped["Hp"], prepped["half"]
    F = 2 * half
    B = t.shape[0]

    if block_n is None:
        tn = _pick_block_n(Hp)
    else:
        tn = block_n
        assert tn % 128 == 0 and Hp % tn == 0, (tn, Hp)
    nj = Hp // tn

    t2d = t.astype(jnp.float32).reshape(B, 1)

    w1_isz = jnp.dtype(w1p.dtype).itemsize
    w2_isz = jnp.dtype(w2p.dtype).itemsize
    out_isz = jnp.dtype(out_dtype).itemsize

    # Honest advisory cost: layer-1 + transcendentals are recomputed per tile.
    cost = pl.CostEstimate(
        flops=int(nj * 2 * B * F * Hp + 2 * B * Hp * Hp),
        transcendentals=int(nj * B * (F + Hp)),            # cos, sin, sigmoid
        bytes_accessed=int(w1p.size * w1_isz + w2p.size * w2_isz
                           + (freqs.size + b1p.size + b2p.size + B) * 4
                           + B * Hp * out_isz),
    )

    # Only override the scoped-VMEM limit when the blocks actually need it
    # (keeps the small-shape path identical to the known-good default).
    need = _vmem_need_bytes(B, F, Hp, tn, w1_isz, w2_isz, out_isz,
                            const_buffers=1 if single_buffer_constants else 2)
    vmem_limit = None
    if need > 12 * 1024 * 1024:
        vmem_limit = min(int(need * 1.25) + (1 << 20), 100 * 1024 * 1024)

    def const_spec(shape):
        # Constant block index -> the pipeline only DMAs these once; optionally
        # drop the dead second buffer to free VMEM headroom at very large Hp.
        if single_buffer_constants:
            return pl.BlockSpec(shape, lambda j: (0, 0),
                                pipeline_mode=pl.Buffered(1))
        return pl.BlockSpec(shape, lambda j: (0, 0))

    out = pl.pallas_call(
        embedder_kernel,
        out_shape=jax.ShapeDtypeStruct((B, Hp), out_dtype),
        grid_spec=pltpu.PrefetchScalarGridSpec(
            num_scalar_prefetch=0,
            grid=(nj,),
            in_specs=[
                const_spec((B, 1)),                            # t
                const_spec((1, half)),                         # freqs
                const_spec((F, Hp)),                           # w1 (single K=F)
                const_spec((1, Hp)),                           # b1
                pl.BlockSpec((Hp, tn), lambda j: (0, j)),      # w2 tile (streamed)
                pl.BlockSpec((1, tn), lambda j: (0, j)),       # b2 tile
            ],
            out_specs=pl.BlockSpec((B, tn), lambda j: (0, j)),
        ),
        compiler_params=pltpu.CompilerParams(
            dimension_semantics=("parallel",),
            vmem_limit_bytes=vmem_limit),
        cost_estimate=cost,
    )(t2d, freqs, w1p, b1p, w2p, b2p)

    if keep_padded or H == Hp:
        return out
    return out[:, :H]


def reference_forward(t, params, frequency_embedding_size=256, max_period=10000):
    w1, b1, w2, b2 = params
    half = frequency_embedding_size // 2
    freqs = jnp.exp(-math.log(max_period) * jnp.arange(half, dtype=jnp.float32) / half)
    args = t.astype(jnp.float32)[:, None] * freqs[None]
    emb = jnp.concatenate([jnp.cos(args), jnp.sin(args)], axis=-1)
    h = emb @ w1.T + b1
    h = h * jax.nn.sigmoid(h)
    return h @ w2.T + b2


if __name__ == "__main__":
    B = 8          # batch of timesteps
    HIDDEN = 32
    FREQ = 256

    key = jax.random.PRNGKey(0)
    k_t, k_w1, k_w2 = jax.random.split(key, 3)

    # Mirror the module init: weights ~ N(0, 0.02), biases = 0.
    w1 = 0.02 * jax.random.normal(k_w1, (HIDDEN, FREQ), dtype=jnp.float32)
    b1 = jnp.zeros((HIDDEN,), dtype=jnp.float32)
    w2 = 0.02 * jax.random.normal(k_w2, (HIDDEN, HIDDEN), dtype=jnp.float32)
    b2 = jnp.zeros((HIDDEN,), dtype=jnp.float32)
    params = (w1, b1, w2, b2)

    t = jax.random.uniform(k_t, (B,), dtype=jnp.float32, minval=0.0, maxval=1000.0)

    # One-time parameter prep (transpose / pad / dtype cast / freq table).
    prepped = prepare_embedder_params(w1, b1, w2, b2, frequency_embedding_size=FREQ)
    ref = reference_forward(t, params, frequency_embedding_size=FREQ)

    # Default path: f32 output, sliced back to H.
    out = jax.block_until_ready(embedder_forward(t, prepped))
    assert out.shape == (B, HIDDEN), out.shape
    # bf16 W2 stream -> relaxed tolerance vs the pure-f32 reference.
    assert jnp.allclose(out, ref, atol=1e-2, rtol=1e-2), float(jnp.abs(out - ref).max())

    # Fused-consumer path: bf16, lane-dense Hp-padded output (padded lanes == 0).
    out_pad = jax.block_until_ready(
        embedder_forward(t, prepped, out_dtype=jnp.bfloat16, keep_padded=True))
    assert out_pad.shape == (B, prepped["Hp"]), out_pad.shape
    assert jnp.allclose(out_pad[:, :HIDDEN].astype(jnp.float32), ref,
                        atol=2e-2, rtol=2e-2)
    assert jnp.all(out_pad[:, HIDDEN:] == 0)

    print("KERNEL_OK")
</pallas_src>

<mosaic_0001>
module attributes {stable_mosaic.version = 11 : i64} {
  func.func @embedder_kernel(%arg0: i32, %arg1: memref<8x1xf32, #tpu.memory_space<vmem>>, %arg2: memref<1x128xf32, #tpu.memory_space<vmem>>, %arg3: memref<256x128xf32, #tpu.memory_space<vmem>>, %arg4: memref<1x128xf32, #tpu.memory_space<vmem>>, %arg5: memref<128x128xbf16, #tpu.memory_space<vmem>>, %arg6: memref<1x128xf32, #tpu.memory_space<vmem>>, %arg7: memref<8x128xf32, #tpu.memory_space<vmem>>) attributes {dimension_semantics = [#tpu.dimension_semantics<parallel>], iteration_bounds = array<i64: 1>, scalar_prefetch = 0 : i64, scratch_operands = 0 : i64, tpu.core_type = #tpu.core_type<tc>, window_params = [{pipeline_mode = #tpu.pipeline_mode<synchronous>, transform_indices = @transform_0, window_bounds = array<i64: 8, 1>}, {pipeline_mode = #tpu.pipeline_mode<synchronous>, transform_indices = @transform_1, window_bounds = array<i64: 1, 128>}, {pipeline_mode = #tpu.pipeline_mode<synchronous>, transform_indices = @transform_2, window_bounds = array<i64: 256, 128>}, {pipeline_mode = #tpu.pipeline_mode<synchronous>, transform_indices = @transform_3, window_bounds = array<i64: 1, 128>}, {transform_indices = @transform_4, window_bounds = array<i64: 128, 128>}, {transform_indices = @transform_5, window_bounds = array<i64: 1, 128>}, {transform_indices = @transform_6, window_bounds = array<i64: 8, 128>}]} {
    %c0 = arith.constant 0 : index
    %c0_0 = arith.constant 0 : index
    %0 = vector.load %arg1[%c0, %c0_0] : memref<8x1xf32, #tpu.memory_space<vmem>>, vector<8x1xf32>
    %c0_1 = arith.constant 0 : index
    %c0_2 = arith.constant 0 : index
    %1 = vector.load %arg2[%c0_1, %c0_2] : memref<1x128xf32, #tpu.memory_space<vmem>>, vector<1x128xf32>
    %2 = vector.broadcast %0 : vector<8x1xf32> to vector<8x128xf32>
    %3 = vector.broadcast %1 : vector<1x128xf32> to vector<8x128xf32>
    %4 = arith.mulf %2, %3 : vector<8x128xf32>
    %5 = math.cos %4 : vector<8x128xf32>
    %6 = math.sin %4 : vector<8x128xf32>
    %7 = tpu.concatenate %5, %6 in 1 : vector<8x128xf32>, vector<8x128xf32> -> vector<8x256xf32>
    %c0_3 = arith.constant 0 : index
    %c0_4 = arith.constant 0 : index
    %8 = vector.load %arg3[%c0_3, %c0_4] : memref<256x128xf32, #tpu.memory_space<vmem>>, vector<256x128xf32>
    %cst = arith.constant dense<0.000000e+00> : vector<8x128xf32>
    %9 = tpu.matmul %7, %8, %cst {dimension_numbers = #tpu.dot_dimension_numbers<[1], [0], [0], [1], [0, 0, 1, 1], [], []>} : vector<8x256xf32>, vector<256x128xf32>, vector<8x128xf32> -> vector<8x128xf32>
    %c0_5 = arith.constant 0 : index
    %c0_6 = arith.constant 0 : index
    %10 = vector.load %arg4[%c0_5, %c0_6] : memref<1x128xf32, #tpu.memory_space<vmem>>, vector<1x128xf32>
    %11 = vector.broadcast %10 : vector<1x128xf32> to vector<8x128xf32>
    %12 = arith.addf %9, %11 : vector<8x128xf32>
    %13 = arith.negf %12 : vector<8x128xf32>
    %14 = math.exp %13 : vector<8x128xf32>
    %cst_7 = arith.constant 1.000000e+00 : f32
    %15 = vector.broadcast %cst_7 : f32 to vector<8x128xf32>
    %16 = arith.addf %15, %14 : vector<8x128xf32>
    %17 = arith.divf %15, %16 : vector<8x128xf32>
    %18 = arith.mulf %12, %17 : vector<8x128xf32>
    %19 = arith.truncf %18 : vector<8x128xf32> to vector<8x128xbf16>
    %c0_8 = arith.constant 0 : index
    %c0_9 = arith.constant 0 : index
    %20 = vector.load %arg5[%c0_8, %c0_9] : memref<128x128xbf16, #tpu.memory_space<vmem>>, vector<128x128xbf16>
    %cst_10 = arith.constant dense<0.000000e+00> : vector<8x128xf32>
    %21 = tpu.matmul %19, %20, %cst_10 {dimension_numbers = #tpu.dot_dimension_numbers<[1], [0], [0], [1], [0, 0, 1, 1], [], []>} : vector<8x128xbf16>, vector<128x128xbf16>, vector<8x128xf32> -> vector<8x128xf32>
    %c0_11 = arith.constant 0 : index
    %c0_12 = arith.constant 0 : index
    %22 = vector.load %arg6[%c0_11, %c0_12] : memref<1x128xf32, #tpu.memory_space<vmem>>, vector<1x128xf32>
    %23 = vector.broadcast %22 : vector<1x128xf32> to vector<8x128xf32>
    %24 = arith.addf %21, %23 : vector<8x128xf32>
    %c0_13 = arith.constant 0 : index
    %c0_14 = arith.constant 0 : index
    %25 = vector.load %arg7[%c0_13, %c0_14] : memref<8x128xf32, #tpu.memory_space<vmem>>, vector<8x128xf32>
    tpu.vector_store %arg7[%c0_13, %c0_14], %24 {strides = array<i32>} : memref<8x128xf32, #tpu.memory_space<vmem>>, vector<8x128xf32>,
    return
  }
  func.func @transform_0(%arg0: i32) -> (i32, i32) {
    %c0_i32 = arith.constant 0 : i32
    %c0_i32_0 = arith.constant 0 : i32
    %c0_i32_1 = arith.constant 0 : i32
    return %c0_i32, %c0_i32_0 : i32, i32
  }
  func.func @transform_1(%arg0: i32) -> (i32, i32) {
    %c0_i32 = arith.constant 0 : i32
    %c0_i32_0 = arith.constant 0 : i32
    %c0_i32_1 = arith.constant 0 : i32
    return %c0_i32, %c0_i32_0 : i32, i32
  }
  func.func @transform_2(%arg0: i32) -> (i32, i32) {
    %c0_i32 = arith.constant 0 : i32
    %c0_i32_0 = arith.constant 0 : i32
    %c0_i32_1 = arith.constant 0 : i32
    return %c0_i32, %c0_i32_0 : i32, i32
  }
  func.func @transform_3(%arg0: i32) -> (i32, i32) {
    %c0_i32 = arith.constant 0 : i32
    %c0_i32_0 = arith.constant 0 : i32
    %c0_i32_1 = arith.constant 0 : i32
    return %c0_i32, %c0_i32_0 : i32, i32
  }
  func.func @transform_4(%arg0: i32) -> (i32, i32) {
    %c0_i32 = arith.constant 0 : i32
    %c0_i32_0 = arith.constant 0 : i32
    return %c0_i32, %arg0 : i32, i32
  }
  func.func @transform_5(%arg0: i32) -> (i32, i32) {
    %c0_i32 = arith.constant 0 : i32
    %c0_i32_0 = arith.constant 0 : i32
    return %c0_i32, %arg0 : i32, i32
  }
  func.func @transform_6(%arg0: i32) -> (i32, i32) {
    %c0_i32 = arith.constant 0 : i32
    %c0_i32_0 = arith.constant 0 : i32
    return %c0_i32, %arg0 : i32, i32
  }
}

</mosaic_0001>

<bundles_post_ra>
// kernel: tpu_custom_call.1
= control target key start
LH: loop header
LB: loop body
LE: loop exit
PB: predicated region body
PF: predicated region fallthrough
CT: control target
= control target key end

     0   :  { %11 = vsyncpa [#allocation3], 0  ;;  %s864_s0 = inlined_call_operand.vmem [shape: f32[8,1], index: 0, kind: input, shape index: {}]   ;;  %s865_s1 = inlined_call_operand.vmem [shape: f32[1,128], index: 1, kind: input, shape index: {}]   ;;  %s866_s2 = inlined_call_operand.hbm [shape: f32[256,128], index: 2, kind: input, shape index: {}]   ;;  %s867_s3 = inlined_call_operand.vmem [shape: f32[1,128], index: 3, kind: input, shape index: {}]   ;;  %s868_s4 = inlined_call_operand.hbm [shape: bf16[128,128], index: 4, kind: input, shape index: {}]   ;;  %s869_s5 = inlined_call_operand.vmem [shape: f32[1,128], index: 5, kind: input, shape index: {}]   ;;  %s870_s6 = inlined_call_operand.hbm [shape: f32[8,128], index: 6, kind: output, shape index: {}]  }
   0x1   :  { %12 = vsyncpa [#allocation6], 0 }
   0x2   :  { %13 = vsyncpa [#allocation4], 0  ;;  %s744_s21 = smov [#allocation2]   ;;  %s672_s25 = scalar_lea.hbm %s866_s2, 4096 }
   0x3   :  { %s23_s22 = sshll.u32 %s744_s21, 4  ;;  %p673_p0 = scmp.ne.s32.totalorder %s866_s2, %s672_s25  ;;  %s24_s22 = int_to_ptr.vmem [resolvable:$true] %s23_s22 }
   0x4   :  { %p676_p1 = scmp.lt.u32.totalorder %s672_s25, %s866_s2 }
   0x6   :  { %p678_p2 = pnand %p676_p1, %p673_p0 }
   0x8   :  { %681 = shalt.err (!%p678_p2)
}
   0x9   :  { %s682_s30 = scalar_lea.vmem %s24_s22, 4096  ;;  %p687_p4 = scmp.lt.s32.totalorder %s24_s22, %s24_s22 }
   0xa   :  { %p683_p3 = scmp.ne.s32.totalorder %s24_s22, %s682_s30  ;;  %p688_p5 = scmp.lt.s32.totalorder %s682_s30, %s682_s30 }
   0xc   :  { %p689_p6 = por %p688_p5, %p687_p4 }
   0xe   :  { %p690_p7 = pnand %p689_p6, %p683_p3 }
  0x10   :  { %693 = shalt.err (!%p690_p7)
}
  0x11   :  { %s745_s7 = smov 128   ;;  %s746_s8 = smov 8  }
  0x12   :  { %29 = dma.hbm_to_vmem [thread:$0]  %s866_s2, 4096, %s24_s22, [#allocation3], %s745_s7, %s745_s7, %s746_s8  }
  0x13   :  { %s747_s11 = smov [#allocation5]   ;;  %s694_s15 = scalar_lea.hbm %s868_s4, 1024 }
  0x14   :  { %s37_s12 = sshll.u32 %s747_s11, 4  ;;  %p695_p8 = scmp.ne.s32.totalorder %s868_s4, %s694_s15  ;;  %s38_s12 = int_to_ptr.vmem [resolvable:$true] %s37_s12 }
  0x15   :  { %p698_p9 = scmp.lt.u32.totalorder %s694_s15, %s868_s4 }
  0x17   :  { %p700_p10 = pnand %p698_p9, %p695_p8 }
  0x19   :  { %703 = shalt.err (!%p700_p10)
}
  0x1a   :  { %s704_s20 = scalar_lea.vmem %s38_s12, 1024  ;;  %p709_p12 = scmp.lt.s32.totalorder %s38_s12, %s38_s12 }
  0x1b   :  { %p705_p11 = scmp.ne.s32.totalorder %s38_s12, %s704_s20  ;;  %p710_p13 = scmp.lt.s32.totalorder %s704_s20, %s704_s20 }
  0x1d   :  { %p711_p0 = por %p710_p13, %p709_p12 }
  0x1f   :  { %p712_p1 = pnand %p711_p0, %p705_p11 }
  0x21   :  { %715 = shalt.err (!%p712_p1)
}
  0x22   :  { %s748_s2 = smov 64   ;;  %s749_s21 = smov 4  }
  0x23   :  { %43 = dma.hbm_to_vmem [thread:$0]  %s868_s4, 1024, %s38_s12, [#allocation6], %s748_s2, %s748_s2, %s749_s21  }
  0x24   :  { %738 = dma.done.wait [#allocation3], 4096  }
  0x25   :  { %739 = vsyncadd [#allocation3], 4294963200 }
  0x26   :  { %740 = dma.done.wait [#allocation6], 1024  }
  0x27   :  { %741 = vsyncadd [#allocation6], 4294966272  ;;  %v750_v0 = vmov 0   ;;  %v53_v1 = vld [vmem:[%s864_s0] sm:$0xff]  ;;  %v291_v3 = vld [vmem:[#allocation2 + $0x88] sm:$0xff]  ;;  %s759_s29 = smov [#allocation7]  }
  0x28   :  { %655 = vset.pattern.permute.xlu0 %v750_v0  ;;  %v290_v2 = vld [vmem:[#allocation2 + $0x80] sm:$0xff]  ;;  %v275_v6 = vld [vmem:[#allocation2 + $0x8] sm:$0xff]  ;;  %v292_v7 = vld [vmem:[#allocation2 + $0x90] sm:$0xff]  ;;  %v751_v0 = vmov 2102212464   ;;  %s509_s30 = sshll.u32 %s759_s29, 4  ;;  %s510_s30 = int_to_ptr.vmem [resolvable:$true] %s509_s30 }
  0x29   :  { %57 = vperm.xlu0 %655, %v53_v1   ;;  %v274_v4 = vld [vmem:[#allocation2] sm:$0xff]  ;;  %v603_v5 = vpack.c.bf16 %v291_v3, %v290_v2  ;;  %v293_v8 = vld [vmem:[#allocation2 + $0x98] sm:$0xff]  ;;  %v276_v11 = vld [vmem:[#allocation2 + $0x10] sm:$0xff]  ;;  %v752_v2 = vmov 920167782   ;;  %p721_p3 = scmp.lt.s32.totalorder %s510_s30, %s510_s30 }
  0x2a   :  { %v605_v9 = vpack.c.bf16 %v275_v6, %v274_v4  ;;  %v607_v10 = vpack.c.bf16 %v293_v8, %v292_v7  ;;  %v277_v12 = vld [vmem:[#allocation2 + $0x18] sm:$0xff]  ;;  %v294_v13 = vld [vmem:[#allocation2 + $0xa0] sm:$0xff]  ;;  %v295_v14 = vld [vmem:[#allocation2 + $0xa8] sm:$0xff]  ;;  %v753_v6 = vmov 1326507024  }
  0x2b   :  { %604 = vmatprep.subr.bf16.mxu0 %v603_v5  ;;  %v609_v15 = vpack.c.bf16 %v277_v12, %v276_v11  ;;  %v611_v16 = vpack.c.bf16 %v295_v14, %v294_v13  ;;  %v278_v17 = vld [vmem:[#allocation2 + $0x20] sm:$0xff]  ;;  %v279_v18 = vld [vmem:[#allocation2 + $0x28] sm:$0xff]  ;;  %v296_v19 = vld [vmem:[#allocation2 + $0xb0] sm:$0xff]  ;;  %v754_v8 = vmov 683565275  }
  0x2c   :  { %606 = vmatpush3.bf16.msra.mxu0 %v605_v9  ;;  %v297_v20 = vld [vmem:[#allocation2 + $0xb8] sm:$0xff]  ;;  %v613_v21 = vpack.c.bf16 %v279_v18, %v278_v17  ;;  %v280_v23 = vld [vmem:[#allocation2 + $0x30] sm:$0xff]  ;;  %v298_v25 = vld [vmem:[#allocation2 + $0xc0] sm:$0xff]  ;;  %v756_v13 = vmov 2131351028  }
  0x2d   :  { %608 = vmatprep.subr.bf16.mxu0 %v607_v10  ;;  %v615_v22 = vpack.c.bf16 %v297_v20, %v296_v19  ;;  %v281_v24 = vld [vmem:[#allocation2 + $0x38] sm:$0xff]  ;;  %v299_v26 = vld [vmem:[#allocation2 + $0xc8] sm:$0xff]  ;;  %v282_v29 = vld [vmem:[#allocation2 + $0x40] sm:$0xff]  ;;  %v755_v10 = vmov 2475754826  }
  0x2e   :  { %v617_v27 = vpack.c.bf16 %v281_v24, %v280_v23  ;;  %v619_v28 = vpack.c.bf16 %v299_v26, %v298_v25  ;;  %v283_v30 = vld [vmem:[#allocation2 + $0x48] sm:$0xff]  ;;  %v300_v31 = vld [vmem:[#allocation2 + $0xd0] sm:$0xff]  ;;  %v301_v32 = vld [vmem:[#allocation2 + $0xd8] sm:$0xff] }
  0x2f   :  { %v621_v33 = vpack.c.bf16 %v283_v30, %v282_v29  ;;  %v623_v34 = vpack.c.bf16 %v301_v32, %v300_v31  ;;  %v284_v35 = vld [vmem:[#allocation2 + $0x50] sm:$0xff]  ;;  %v285_v36 = vld [vmem:[#allocation2 + $0x58] sm:$0xff]  ;;  %v302_v37 = vld [vmem:[#allocation2 + $0xe0] sm:$0xff] }
  0x30   :  { %610 = vmatpush3.bf16.msra.mxu0 %v609_v15  ;;  %v303_v38 = vld [vmem:[#allocation2 + $0xe8] sm:$0xff]  ;;  %v625_v39 = vpack.c.bf16 %v285_v36, %v284_v35  ;;  %v286_v41 = vld [vmem:[#allocation2 + $0x60] sm:$0xff]  ;;  %v304_v43 = vld [vmem:[#allocation2 + $0xf0] sm:$0xff] }
  0x31   :  { %612 = vmatprep.subr.bf16.mxu0 %v611_v16  ;;  %v627_v40 = vpack.c.bf16 %v303_v38, %v302_v37  ;;  %v287_v42 = vld [vmem:[#allocation2 + $0x68] sm:$0xff]  ;;  %v305_v44 = vld [vmem:[#allocation2 + $0xf8] sm:$0xff]  ;;  %v288_v47 = vld [vmem:[#allocation2 + $0x70] sm:$0xff] }
  0x32   :  { %v629_v45 = vpack.c.bf16 %v287_v42, %v286_v41  ;;  %v631_v46 = vpack.c.bf16 %v305_v44, %v304_v43  ;;  %v289_v48 = vld [vmem:[#allocation2 + $0x78] sm:$0xff]  ;;  %v519_v50 = vld [vmem:[%s865_s1] ss:$0 sm:$0xff] }
  0x33   :  { %v633_v49 = vpack.c.bf16 %v289_v48, %v288_v47 }
  0x34   :  { %614 = vmatpush3.bf16.msra.mxu0 %v613_v21 }
  0x35   :  { %616 = vmatprep.subr.bf16.mxu0 %v615_v22 }
  0x38   :  { %618 = vmatpush3.bf16.msra.mxu0 %v617_v27 }
  0x39   :  { %620 = vmatprep.subr.bf16.mxu0 %v619_v28 }
  0x3c   :  { %622 = vmatpush3.bf16.msra.mxu0 %v621_v33 }
  0x3d   :  { %624 = vmatprep.subr.bf16.mxu0 %v623_v34 }
  0x40   :  { %626 = vmatpush3.bf16.msra.mxu0 %v625_v39 }
  0x41   :  { %628 = vmatprep.subr.bf16.mxu0 %v627_v40 }
  0x44   :  { %630 = vmatpush3.bf16.msra.mxu0 %v629_v45 }
  0x45   :  { %632 = vmatprep.subr.bf16.mxu0 %v631_v46 }
  0x48   :  { %634 = vmatpush3.bf16.msra.mxu0 %v633_v49 }
  0xa8   :  { %v58_v51 = vpop.permute.xlu0 %57 }
  0xa9   :  { %v825_v52 = vmul.f32 %v519_v50, %v58_v51 }
  0xab   :  { %v70_v53 = vand.u32 2139095040, %v825_v52  ;;  %v67_v54 = vand.u32 2147483647, %v825_v52  ;;  %vm69_vm7 = vcmp.lt.s32.totalorder %v825_v52, 0  ;;  %vm159_vm15 = vweird.f32 %v825_v52 }
  0xad   :  { %v71_v55 = vshrl.u32 %v70_v53, 23  ;;  %v74_v57 = vand.u32 8388607, %v67_v54  ;;  %vm68_vm8 = vcmp.le.f32.partialorder %v67_v54, 0.7853982 }
  0xaf   :  { %v520_v56 = vadd.s32 4294967169, %v71_v55  ;;  %v75_v60 = vor.u32 8388608, %v74_v57 }
  0xb1   :  { %v77_v58 = vadd.s32 1, %v520_v56  ;;  %v115_v4 = vshll.u32 %v75_v60, 8 }
  0xb3   :  { %vm78_vm0 = vcmp.gt.s32.totalorder %v77_v58, 0 }
  0xb4   :  { %v79_v59 = vsel %vm78_vm0, %v77_v58, 0  ;;  %vm758_vm0 = vmmov 0  }
  0xb5   :  { %v81_v61 = vand.u32 31, %v79_v59  ;;  %v80_v62 = vshrl.u32 %v79_v59, 5 }
  0xb7   :  { %v82_v63 = vsub.s32 32, %v81_v61  ;;  %v93_v1 = vshll.u32 %v751_v0, %v81_v61  ;;  %v96_v3 = vshll.u32 %v752_v2, %v81_v61  ;;  %v84_v9 = vshll.u32 %v754_v8, %v81_v61 }
  0xb8   :  { %v87_v12 = vshll.u32 %v755_v10, %v81_v61  ;;  %v90_v15 = vshll.u32 %v756_v13, %v81_v61  ;;  %vm102_vm1 = vcmp.lt.s32.totalorder %v80_v62, 4  ;;  %vm99_vm2 = vcmp.lt.s32.totalorder %v80_v62, 1 }
  0xb9   :  { %v94_v5 = vshrl.u32 %v752_v2, %v82_v63  ;;  %v97_v7 = vshrl.u32 %v753_v6, %v82_v63  ;;  %v85_v11 = vshrl.u32 %v755_v10, %v82_v63  ;;  %v88_v14 = vshrl.u32 %v756_v13, %v82_v63 }
  0xba   :  { %v91_v16 = vshrl.u32 %v751_v0, %v82_v63  ;;  %v83_v20 = vshrl.u32 %v754_v8, %v82_v63  ;;  %vm100_vm3 = vcmp.lt.s32.totalorder %v80_v62, 2  ;;  %vm101_vm4 = vcmp.lt.s32.totalorder %v80_v62, 3 }
  0xbb   :  { %v95_v17 = vor.u32 %v94_v5, %v93_v1  ;;  %v98_v18 = vor.u32 %v97_v7, %v96_v3  ;;  %v86_v19 = vor.u32 %v85_v11, %v84_v9  ;;  %v89_v21 = vor.u32 %v88_v14, %v87_v12 }
  0xbc   :  { %v92_v22 = vor.u32 %v91_v16, %v90_v15 }
  0xbd   :  { %v108_v23 = vsel %vm102_vm1, %v95_v17, 920167782  ;;  %v112_v24 = vsel %vm102_vm1, %v98_v18, 1326507024  ;;  %v107_v26 = vsel %vm99_vm2, %v86_v19, %v89_v21  ;;  %v103_v29 = vsel %vm99_vm2, %v83_v20, %v86_v19 }
  0xbe   :  { %v104_v25 = vsel %vm102_vm1, %v92_v22, 2102212464  ;;  %v109_v27 = vsel %vm101_vm4, %v92_v22, %v108_v23  ;;  %v111_v28 = vsel %vm99_vm2, %v89_v21, %v92_v22  ;;  %v113_v32 = vsel %vm101_vm4, %v95_v17, %v112_v24  ;;  %v656_v22 = vld [vmem:[#allocation5] sm:$0xff]   ;;  %v657_v24 = vld [vmem:[#allocation5 + $0x8] sm:$0xff]  }
  0xbf   :  { %v105_v30 = vsel %vm101_vm4, %v89_v21, %v104_v25  ;;  %v110_v31 = vsel %vm100_vm3, %v107_v26, %v109_v27  ;;  %v114_v33 = vsel %vm100_vm3, %v111_v28, %v113_v32  ;;  %v757_v23 = vmov 0.0   ;;  %v658_v25 = vld [vmem:[#allocation5 + $0x10] sm:$0xff]   ;;  %v659_v26 = vld [vmem:[#allocation5 + $0x18] sm:$0xff]   ;;  %v661_v27 = vld [vmem:[#allocation5 + $0x28] sm:$0xff]  }
  0xc0   :  { %v831_v34 = vmul.u32.u64.low %v115_v4, %v110_v31  ;;  %v832_v35 = vmul.u32.u64.high %v115_v4, %v110_v31, %v831_v34  ;;  %v834_v36 = vmul.u32.u64.low %v115_v4, %v114_v33  ;;  %v835_v37 = vmul.u32.u64.high %v115_v4, %v114_v33, %v834_v36  ;;  %583 = vmatprep.subr.bf16.mxu1 %v757_v23  ;;  %599 = vmatprep.mubr.msk.bf16.mxu1 %vm758_vm0, %v757_v23  ;;  %v662_v28 = vld [vmem:[#allocation5 + $0x30] sm:$0xff]   ;;  %v528_v31 = vld [vmem:[%s867_s3] ss:$0 sm:$0xff]  ;;  %s716_s3 = scalar_lea.vmem %s510_s30, 128 }
  0xc1   :  { %v106_v38 = vsel %vm100_vm3, %v103_v29, %v105_v30  ;;  %584 = vmatpush3.bf16.msra.mxu1 %v656_v22  ;;  %v663_v29 = vld [vmem:[#allocation5 + $0x38] sm:$0xff]   ;;  %p717_p2 = scmp.ne.s32.totalorder %s510_s30, %s716_s3  ;;  %p722_p4 = scmp.lt.s32.totalorder %s716_s3, %s716_s3 }
  0xc2   :  { %v125_v39 = vadd.s32 1, %v832_v35  ;;  %v122_v40 = vmul.u32 %v115_v4, %v106_v38  ;;  %vm124_vm5 = vc.u32 %v835_v37, %v831_v34  ;;  %v123_v53 = vadd.s32 %v831_v34, %v835_v37  ;;  %585 = vmatprep.subr.bf16.mxu1 %v757_v23 }
  0xc3   :  { %p723_p5 = por %p722_p4, %p721_p3 }
  0xc4   :  { %v126_v41 = vsel %vm124_vm5, %v125_v39, %v832_v35 }
  0xc5   :  { %v127_v42 = vadd.s32 %v126_v41, %v122_v40  ;;  %586 = vmatpush3.bf16.msra.mxu1 %v657_v24  ;;  %v530_v41 = vld [vmem:[%s869_s5] ss:$0 sm:$0xff]  ;;  %p724_p6 = pnand %p723_p5, %p717_p2 }
  0xc6   :  { %587 = vmatprep.subr.bf16.mxu1 %v757_v23 }
  0xc7   :  { %v128_v43 = vadd.s32 536870912, %v127_v42 }
  0xc9   :  { %v129_v44 = vshrl.u32 %v128_v43, 30  ;;  %588 = vmatpush3.bf16.msra.mxu1 %v658_v25 }
  0xca   :  { %589 = vmatprep.subr.bf16.mxu1 %v757_v23 }
  0xcb   :  { %v130_v45 = vshll.u32 %v129_v44, 30  ;;  %v153_v2 = vsub.s32 4, %v129_v44 }
  0xcd   :  { %v131_v46 = vsub.s32 %v127_v42, %v130_v45  ;;  %v154_v5 = vsel %vm69_vm7, %v153_v2, %v129_v44  ;;  %590 = vmatpush3.bf16.msra.mxu1 %v659_v26 }
  0xce   :  { %v156_v7 = vsel %vm68_vm8, 0, %v154_v5  ;;  %591 = vmatprep.subr.bf16.mxu1 %v757_v23 }
  0xcf   :  { %v133_v47 = vsub.s32 0, %v131_v46  ;;  %v263_v8 = vadd.s32 3, %v156_v7  ;;  %v160_v10 = vand.u32 3, %v156_v7 }
  0xd1   :  { %v521_v48 = vmin.u32 %v133_v47, %v131_v46  ;;  %v264_v9 = vand.u32 3, %v263_v8  ;;  %vm165_vm10 = vcmp.eq.s32.totalorder %v160_v10, 2  ;;  %vm162_vm12 = vcmp.eq.s32.totalorder %v160_v10, 0 }
  0xd2   :  { %vm161_vm14 = vcmp.lt.s32.totalorder %v160_v10, 2 }
  0xd3   :  { %v135_v49 = vclz %v521_v48  ;;  %vm269_vm9 = vcmp.eq.s32.totalorder %v264_v9, 2  ;;  %vm266_vm11 = vcmp.eq.s32.totalorder %v264_v9, 0  ;;  %vm265_vm13 = vcmp.lt.s32.totalorder %v264_v9, 2 }
  0xd5   :  { %v522_v50 = vadd.s32 4294967294, %v135_v49 }
  0xd7   :  { %vm523_vm6 = vcmp.lt.s32.totalorder %v522_v50, 0 }
  0xd8   :  { %v138_v51 = vsel %vm523_vm6, 0, %v522_v50 }
  0xd9   :  { %v139_v55 = vsub.s32 32, %v138_v51  ;;  %v143_v56 = vsub.s32 4294967266, %v138_v51  ;;  %v140_v57 = vshll.u32 %v131_v46, %v138_v51 }
  0xdb   :  { %v141_v58 = vshrl.u32 %v123_v53, %v139_v55  ;;  %v144_v59 = vadd.s32 127, %v143_v56 }
  0xdd   :  { %v142_v60 = vor.u32 %v141_v58, %v140_v57  ;;  %v145_v61 = vshll.u32 %v144_v59, 23 }
  0xdf   :  { %v146_v62 = vor.u32 4788187, %v145_v61  ;;  %v149_v0 = vcvt.s32.f32 %v142_v60 }
  0xe1   :  { %v147_v63 = vand.u32 2147483647, %v146_v62 }
  0xe3   :  { %v150_v1 = vmul.f32 %v149_v0, %v147_v63 }
  0xe5   :  { %v151_v3 = vxor.u32 2147483648, %v150_v1 }
  0xe7   :  { %v152_v4 = vsel %vm69_vm7, %v151_v3, %v150_v1 }
  0xe8   :  { %v155_v6 = vsel %vm68_vm8, %v825_v52, %v152_v4  ;;  %v660_v52 = vld [vmem:[#allocation5 + $0x20] sm:$0xff]  }
  0xe9   :  { %664 = vcosq.f32 %v155_v6  ;;  %592 = vmatpush3.bf16.msra.mxu1 %v660_v52 }
  0xea   :  { %666 = vsinq.f32 %v155_v6  ;;  %593 = vmatprep.subr.bf16.mxu1 %v757_v23 }
  0xed   :  { %594 = vmatpush3.bf16.msra.mxu1 %v661_v27 }
  0xee   :  { %595 = vmatprep.subr.bf16.mxu1 %v757_v23 }
  0xf1   :  { %596 = vmatpush3.bf16.msra.mxu1 %v662_v28 }
  0xf2   :  { %597 = vmatprep.subr.bf16.mxu1 %v757_v23 }
  0xf3   :  { %v665_v11 = vpop.eup %664 }
  0xf4   :  { %v667_v12 = vpop.eup %666  ;;  %v166_v13 = vxor.u32 2147483648, %v665_v11 }
  0xf5   :  { %v163_v14 = vxor.u32 2147483648, %v667_v12  ;;  %598 = vmatpush3.bf16.msra.mxu1 %v663_v29 }
  0xf6   :  { %v271_v15 = vsel %vm269_vm9, %v166_v13, %v667_v12  ;;  %v167_v54 = vsel %vm165_vm10, %v166_v13, %v667_v12 }
  0xf7   :  { %v268_v16 = vsel %vm266_vm11, %v665_v11, %v163_v14  ;;  %v164_v17 = vsel %vm162_vm12, %v665_v11, %v163_v14 }
  0xf8   :  { %v272_v18 = vsel %vm265_vm13, %v268_v16, %v271_v15  ;;  %v168_v19 = vsel %vm161_vm14, %v164_v17, %v167_v54 }
  0xf9   :  { %v273_v20 = vsel %vm159_vm15, nan, %v272_v18  ;;  %v169_v21 = vsel %vm159_vm15, nan, %v168_v19 }
  0xfa   :  { %377 = vmatprep.mubr.f32.mxu0 %v273_v20 }
  0xfb   :  { %378 = vmatmul.mubr.f32.vlgmr.msra.gmra.mrb[0].mxu0 %v169_v21 }
 0x1ce   :  { %v571_v30 = vpop.f32.mrb[0].mxu0 }
 0x1cf   :  { %v572_v32 = vpop.f32.mrb[1].mxu0 }
 0x1d0   :  { %v573_v33 = vadd.f32 %v572_v32, %v571_v30 }
 0x1d2   :  { %v380_v34 = vadd.f32 %v573_v33, %v528_v31 }
 0x1d4   :  { %v529_v35 = vmul.f32 -1.442695, %v380_v34 }
 0x1d6   :  { %668 = vpow2.f32 %v529_v35 }
 0x1e0   :  { %v669_v36 = vpop.eup %668 }
 0x1e1   :  { %v386_v37 = vadd.f32 1.0, %v669_v36 }
 0x1e3   :  { %670 = vrcp.f32 %v386_v37 }
 0x1ed   :  { %v671_v38 = vpop.eup %670 }
 0x1ee   :  { %v389_v39 = vmul.f32 %v671_v38, %v380_v34 }
 0x1f0   :  { %v390_v40 = vpack.c.bf16 %v389_v39, %v389_v39 }
 0x1f2   :  { %600 = vmatmul.mubr.bf16.vlgmr.msra.gmra.mrb[0].mxu1 %v390_v40 }
 0x2c5   :  { %v496_v42 = vpop.f32.mrb[0].mxu1 }
 0x2c6   :  { %v497_v43 = vadd.f32 %v530_v41, %v496_v42  ;;  %v601_v44 = vpop.f32.mrb[1].mxu1 }
 0x2c7   :  { %v499_v45 = vpop.f32.mrb[2].mxu1 }
 0x2c8   :  { %502 = vst [vmem:[#allocation7] sm:$0xff] %v497_v43  ;;  %v602_v46 = vpop.f32.mrb[3].mxu1 }
 0x2c9   :  { %727 = shalt.err (!%p724_p6)
}
 0x2ca   :  { %s728_s5 = scalar_lea.hbm %s870_s6, 128 }
 0x2cb   :  { %p729_p7 = scmp.ne.s32.totalorder %s870_s6, %s728_s5  ;;  %p732_p8 = scmp.lt.u32.totalorder %s728_s5, %s870_s6 }
 0x2cd   :  { %p734_p9 = pnand %p732_p8, %p729_p7 }
 0x2cf   :  { %737 = shalt.err (!%p734_p9)
}
 0x2d0   :  { %512 = dma.vmem_to_hbm [thread:$0]  %s510_s30, 128, %s870_s6, [#allocation4]  }
 0x2d1   :  { %742 = dma.done.wait [#allocation4], 128  }
 0x2d2   :  { %743 = vsyncadd [#allocation4], 4294967168 }
 0x2d3   :  { %516 = vsyncpa [#allocation3], 1 }
 0x2d4   :  { %517 = vsyncpa [#allocation6], 1 }
 0x2d5   :  { %518 = vsyncpa [#allocation4], 1 }

</bundles_post_ra>
